<compile_context>
chip_gen: v6e
topology: v6e:2x2x1
jax: 0.10.0
libtpu: 0.0.40
codegen_flags: <defaults>
</compile_context>

<pallas_src>
import functools

import jax
import jax.numpy as jnp
from jax import lax
from jax.experimental import pallas as pl
from jax.experimental.pallas import tpu as pltpu
import numpy as np


# ---------------- HyperParameters (synthetic, small) ----------------
ENC_HIDDEN = 32          # hps.enc_hidden_size
LATENT_LEN = 16          # hps.latent_vector_length
INPUT_SIZE = 5           # LSTM input feature size (fixed by the module)
SEQ_LEN = 8
BATCH = 2

I_PAD = 8                # padded input feature width (col INPUT_SIZE is the 1-column)
B_CHUNK = 8              # sequences per grid step (f32 sublane friendly)


# ---------------- Pallas kernel ----------------
def discriminator_kernel(x_ref, w_ref, wout_ref, bout_ref, out_ref, *, T, B):
    # Packed column layout of the 8H gate axis (blocks of width H):
    #   [ i_f | i_b | f_f | f_b | g_f | g_b | o_f | o_b ]
    # so every gate slice below is a contiguous 2H block covering [fwd | bwd],
    # matching the [h_fwd | h_bwd] state layout.
    F = x_ref.shape[-1]              # 2 * I_PAD (merged fwd/bwd features + bias col)
    H8 = w_ref.shape[-1]             # 8H
    H2 = H8 // 4                     # 2H

    w_in = w_ref[0:F, :]             # (F, 8H)  bf16, bias row included
    w_hh = w_ref[F:, :]              # (2H, 8H) bf16, block-diagonal

    # Hoisted input projection: ONE matmul for all timesteps, both directions,
    # all four gates; biases fused via the constant-one input column.
    gx = jnp.dot(x_ref[...], w_in,
                 preferred_element_type=jnp.float32)          # (T*B, 8H) f32

    h = jnp.zeros((B, H2), jnp.float32)        # [h_fwd | h_bwd]
    c = jnp.zeros((B, H2), jnp.float32)        # [c_fwd | c_bwd]

    # Fully unrolled merged recurrence: one 256-wide recurrent matmul per step.
    for t in range(T):
        gates = gx[t * B:(t + 1) * B, :] + jnp.dot(
            h.astype(jnp.bfloat16), w_hh,
            preferred_element_type=jnp.float32)               # (B, 8H) f32

        # sigmoid over the whole tile, tanh only on the g block (PyTorch order
        # i, f, g, o over 2H-wide [fwd|bwd] blocks).
        sig = jax.nn.sigmoid(gates)
        i_g = sig[:, 0 * H2:1 * H2]
        f_g = sig[:, 1 * H2:2 * H2]
        o_g = sig[:, 3 * H2:4 * H2]
        g_g = jnp.tanh(gates[:, 2 * H2:3 * H2])
        c = f_g * c + i_g * g_g
        h = o_g * jnp.tanh(c)

    # Fused output head (h_func then fully_connect, no nonlinearity between):
    # N=1 so it is a VPU multiply + lane reduce, no MXU op.
    logit = jnp.sum(h * wout_ref[...], axis=1, keepdims=True) + bout_ref[...]
    out_ref[...] = jax.nn.sigmoid(logit)


def discriminator_forward(x, kparams, *, block_b=B_CHUNK):
    """x: (T, B, I) fp32, seq-first like PyTorch default. Returns decision (B,)."""
    T, B, I = x.shape
    nc = -(-B // block_b)            # number of batch chunks
    Bp = nc * block_b

    # [x | 1 | 0-pad] features; the ones column carries the fused gate biases.
    x_aug = jnp.concatenate(
        [x, jnp.ones((T, B, 1), x.dtype),
         jnp.zeros((T, B, I_PAD - I - 1), x.dtype)], axis=-1)          # (T, B, Ip)
    x_aug = jnp.pad(x_aug, ((0, 0), (0, Bp - B), (0, 0)))              # (T, Bp, Ip)
    # Merged fwd/bwd features per step: [x_t | x_{T-1-t}].
    x_mrg = jnp.concatenate([x_aug, x_aug[::-1]], axis=-1)             # (T, Bp, 2Ip)
    # Batch-chunk major layout: (nc, T*block_b, 2Ip); row = t*block_b + b.
    x_mrg = (x_mrg.reshape(T, nc, block_b, 2 * I_PAD)
             .transpose(1, 0, 2, 3)
             .reshape(nc, T * block_b, 2 * I_PAD)
             .astype(jnp.bfloat16))

    w_slab, w_out, b_out = kparams["w_slab"], kparams["w_out"], kparams["b_out"]

    out = pl.pallas_call(
        functools.partial(discriminator_kernel, T=T, B=block_b),
        out_shape=jax.ShapeDtypeStruct((nc, block_b, 1), jnp.float32),
        grid=(nc,),
        in_specs=[
            pl.BlockSpec((None, T * block_b, 2 * I_PAD), lambda i: (i, 0, 0)),
            pl.BlockSpec(w_slab.shape, lambda i: (0, 0)),   # weights stay resident
            pl.BlockSpec(w_out.shape, lambda i: (0, 0)),
            pl.BlockSpec(b_out.shape, lambda i: (0, 0)),
        ],
        out_specs=pl.BlockSpec((None, block_b, 1), lambda i: (i, 0, 0)),
        compiler_params=pltpu.CompilerParams(
            dimension_semantics=("parallel",)),
    )(x_mrg, w_slab, w_out, b_out)

    return out.reshape(Bp)[:B]       # decision.squeeze()


# ---------------- parameter init (PyTorch-shaped) ----------------
def make_raw_params(key):
    ks = jax.random.split(key, 12)
    H, L, I = ENC_HIDDEN, LATENT_LEN, INPUT_SIZE
    s_lstm = 1.0 / np.sqrt(H)
    s_h = 1.0 / np.sqrt(2 * H)
    s_fc = 1.0 / np.sqrt(L)

    def u(k, shape, s):
        return jax.random.uniform(k, shape, jnp.float32, -s, s)

    return dict(
        w_ih_f=u(ks[0], (4 * H, I), s_lstm), w_hh_f=u(ks[1], (4 * H, H), s_lstm),
        b_ih_f=u(ks[2], (4 * H,), s_lstm),   b_hh_f=u(ks[3], (4 * H,), s_lstm),
        w_ih_b=u(ks[4], (4 * H, I), s_lstm), w_hh_b=u(ks[5], (4 * H, H), s_lstm),
        b_ih_b=u(ks[6], (4 * H,), s_lstm),   b_hh_b=u(ks[7], (4 * H,), s_lstm),
        w_h=u(ks[8], (L, 2 * H), s_h),       b_h=u(ks[9], (L,), s_h),
        w_fc=u(ks[10], (1, L), s_fc),        b_fc=u(ks[11], (1,), s_fc),
    )


# ---------------- kernel-friendly packing ----------------
def pack_params(raw):
    H, I = ENC_HIDDEN, INPUT_SIZE

    def interleave_cols(wf, wb):
        # wf, wb: (..., 4H) in PyTorch gate order [i|f|g|o];
        # output (..., 8H) with layout [i_f|i_b|f_f|f_b|g_f|g_b|o_f|o_b].
        blocks = []
        for k in range(4):
            blocks.append(wf[..., k * H:(k + 1) * H])
            blocks.append(wb[..., k * H:(k + 1) * H])
        return jnp.concatenate(blocks, axis=-1)

    # Input-projection slab rows (2*I_PAD, 8H) matching the merged feature row
    # [x_t (I) | 1 | pad | x_{T-1-t} (I) | 1 | pad]:
    #   rows 0:I      -> forward w_ih into forward gate columns
    #   row  I        -> fused biases (both directions)
    #   rows Ip:Ip+I  -> backward w_ih into backward gate columns
    zeros4h = jnp.zeros((I, 4 * H), jnp.float32)
    wf_cols = interleave_cols(raw["w_ih_f"].T, zeros4h)                 # (I, 8H)
    wb_cols = interleave_cols(zeros4h, raw["w_ih_b"].T)                 # (I, 8H)
    b_f = raw["b_ih_f"] + raw["b_hh_f"]
    b_b = raw["b_ih_b"] + raw["b_hh_b"]
    b_row = interleave_cols(b_f[None, :], b_b[None, :])[0]              # (8H,)

    w_in = jnp.zeros((2 * I_PAD, 8 * H), jnp.float32)
    w_in = w_in.at[0:I, :].set(wf_cols)
    w_in = w_in.at[I, :].set(b_row)
    w_in = w_in.at[I_PAD:I_PAD + I, :].set(wb_cols)
    # (row I_PAD + I corresponds to the reversed ones column and stays zero.)

    # Block-diagonal recurrent weight (2H, 8H): [h_f|h_b] -> per-gate [fwd|bwd].
    whh_f_t = raw["w_hh_f"].T   # (H, 4H)
    whh_b_t = raw["w_hh_b"].T
    w_hh = jnp.zeros((2 * H, 8 * H), jnp.float32)
    for k in range(4):
        w_hh = w_hh.at[0:H, (2 * k) * H:(2 * k + 1) * H].set(
            whh_f_t[:, k * H:(k + 1) * H])
        w_hh = w_hh.at[H:2 * H, (2 * k + 1) * H:(2 * k + 2) * H].set(
            whh_b_t[:, k * H:(k + 1) * H])

    w_slab = jnp.concatenate([w_in, w_hh], axis=0).astype(jnp.bfloat16)  # (2Ip+2H, 8H)

    # Fused output head: hidden @ W_h.T @ W_fc.T + (b_h @ W_fc.T + b_fc).
    w_out = (raw["w_fc"] @ raw["w_h"]).astype(jnp.float32)               # (1, 2H)
    b_out = (raw["b_h"] @ raw["w_fc"].T + raw["b_fc"]).reshape(1, 1)     # (1, 1)

    return dict(w_slab=w_slab, w_out=w_out, b_out=b_out.astype(jnp.float32))


# ---------------- pure-JAX reference (semantics check) ----------------
def reference_forward(x, raw):
    T, B, _ = x.shape
    H = ENC_HIDDEN

    def run(w_ih, w_hh, b_ih, b_hh, xs):
        def step(carry, x_t):
            h, c = carry
            g = x_t @ w_ih.T + h @ w_hh.T + b_ih + b_hh
            i = jax.nn.sigmoid(g[:, :H])
            f = jax.nn.sigmoid(g[:, H:2 * H])
            gg = jnp.tanh(g[:, 2 * H:3 * H])
            o = jax.nn.sigmoid(g[:, 3 * H:])
            c = f * c + i * gg
            h = o * jnp.tanh(c)
            return (h, c), None
        (h, _), _ = lax.scan(step, (jnp.zeros((B, H)), jnp.zeros((B, H))), xs)
        return h

    h_f = run(raw["w_ih_f"], raw["w_hh_f"], raw["b_ih_f"], raw["b_hh_f"], x)
    h_b = run(raw["w_ih_b"], raw["w_hh_b"], raw["b_ih_b"], raw["b_hh_b"], x[::-1])
    hidden = jnp.concatenate([h_f, h_b], axis=1)
    z = hidden @ raw["w_h"].T + raw["b_h"]
    fc = z @ raw["w_fc"].T + raw["b_fc"]
    return jax.nn.sigmoid(fc)[:, 0]


if __name__ == "__main__":
    key = jax.random.PRNGKey(0)
    k_x, k_p = jax.random.split(key)
    x = jax.random.normal(k_x, (SEQ_LEN, BATCH, INPUT_SIZE), jnp.float32)

    raw = make_raw_params(k_p)
    kparams = pack_params(raw)

    out = jax.block_until_ready(discriminator_forward(x, kparams))
    ref = jax.block_until_ready(reference_forward(x, raw))

    assert out.shape == (BATCH,)
    # bf16 matmul operands -> loosened tolerance vs the f32 reference.
    np.testing.assert_allclose(np.asarray(out), np.asarray(ref),
                               rtol=2e-2, atol=2e-2)
    print("KERNEL_OK")
</pallas_src>

<mosaic_0001>
module attributes {stable_mosaic.version = 11 : i64} {
  func.func @discriminator_kernel(%arg0: i32, %arg1: memref<1x64x16xbf16, #tpu.memory_space<vmem>>, %arg2: memref<80x256xbf16, #tpu.memory_space<vmem>>, %arg3: memref<1x64xf32, #tpu.memory_space<vmem>>, %arg4: memref<1x1xf32, #tpu.memory_space<vmem>>, %arg5: memref<1x8x1xf32, #tpu.memory_space<vmem>>) attributes {dimension_semantics = [#tpu.dimension_semantics<parallel>], iteration_bounds = array<i64: 1>, scalar_prefetch = 0 : i64, scratch_operands = 0 : i64, tpu.core_type = #tpu.core_type<tc>, window_params = [{transform_indices = @transform_0, window_bounds = array<i64: 1, 64, 16>}, {pipeline_mode = #tpu.pipeline_mode<synchronous>, transform_indices = @transform_1, window_bounds = array<i64: 80, 256>}, {pipeline_mode = #tpu.pipeline_mode<synchronous>, transform_indices = @transform_2, window_bounds = array<i64: 1, 64>}, {pipeline_mode = #tpu.pipeline_mode<synchronous>, transform_indices = @transform_3, window_bounds = array<i64: 1, 1>}, {transform_indices = @transform_4, window_bounds = array<i64: 1, 8, 1>}]} {
    %c0 = arith.constant 0 : index
    %c0_0 = arith.constant 0 : index
    %0 = vector.load %arg2[%c0, %c0_0] : memref<80x256xbf16, #tpu.memory_space<vmem>>, vector<16x256xbf16>
    %c16 = arith.constant 16 : index
    %c0_1 = arith.constant 0 : index
    %1 = vector.load %arg2[%c16, %c0_1] : memref<80x256xbf16, #tpu.memory_space<vmem>>, vector<64x256xbf16>
    %c0_2 = arith.constant 0 : index
    %c0_3 = arith.constant 0 : index
    %c0_4 = arith.constant 0 : index
    %2 = vector.load %arg1[%c0_2, %c0_3, %c0_4] : memref<1x64x16xbf16, #tpu.memory_space<vmem>>, vector<1x64x16xbf16>
    %3 = vector.shape_cast %2 : vector<1x64x16xbf16> to vector<64x16xbf16>
    %cst = arith.constant dense<0.000000e+00> : vector<64x256xf32>
    %4 = tpu.matmul %3, %0, %cst {dimension_numbers = #tpu.dot_dimension_numbers<[1], [0], [0], [1], [0, 0, 1, 1], [], []>} : vector<64x16xbf16>, vector<16x256xbf16>, vector<64x256xf32> -> vector<64x256xf32>
    %cst_5 = arith.constant 0.000000e+00 : f32
    %5 = vector.broadcast %cst_5 : f32 to vector<8x64xf32>
    %cst_6 = arith.constant 0.000000e+00 : f32
    %6 = vector.broadcast %cst_6 : f32 to vector<8x64xf32>
    %7 = vector.extract_strided_slice %4 {offsets = [0, 0], sizes = [8, 256], strides = [1, 1]} : vector<64x256xf32> to vector<8x256xf32>
    %8 = arith.truncf %5 : vector<8x64xf32> to vector<8x64xbf16>
    %cst_7 = arith.constant dense<0.000000e+00> : vector<8x256xf32>
    %9 = tpu.matmul %8, %1, %cst_7 {dimension_numbers = #tpu.dot_dimension_numbers<[1], [0], [0], [1], [0, 0, 1, 1], [], []>} : vector<8x64xbf16>, vector<64x256xbf16>, vector<8x256xf32> -> vector<8x256xf32>
    %10 = arith.addf %7, %9 : vector<8x256xf32>
    %11 = arith.negf %10 : vector<8x256xf32>
    %12 = math.exp %11 : vector<8x256xf32>
    %cst_8 = arith.constant 1.000000e+00 : f32
    %13 = vector.broadcast %cst_8 : f32 to vector<8x256xf32>
    %14 = arith.addf %13, %12 : vector<8x256xf32>
    %15 = arith.divf %13, %14 : vector<8x256xf32>
    %16 = vector.extract_strided_slice %15 {offsets = [0, 0], sizes = [8, 64], strides = [1, 1]} : vector<8x256xf32> to vector<8x64xf32>
    %17 = vector.extract_strided_slice %15 {offsets = [0, 64], sizes = [8, 64], strides = [1, 1]} : vector<8x256xf32> to vector<8x64xf32>
    %18 = vector.extract_strided_slice %15 {offsets = [0, 192], sizes = [8, 64], strides = [1, 1]} : vector<8x256xf32> to vector<8x64xf32>
    %19 = vector.extract_strided_slice %10 {offsets = [0, 128], sizes = [8, 64], strides = [1, 1]} : vector<8x256xf32> to vector<8x64xf32>
    %20 = math.tanh %19 : vector<8x64xf32>
    %21 = arith.mulf %17, %6 : vector<8x64xf32>
    %22 = arith.mulf %16, %20 : vector<8x64xf32>
    %23 = arith.addf %21, %22 : vector<8x64xf32>
    %24 = math.tanh %23 : vector<8x64xf32>
    %25 = arith.mulf %18, %24 : vector<8x64xf32>
    %26 = vector.extract_strided_slice %4 {offsets = [8, 0], sizes = [8, 256], strides = [1, 1]} : vector<64x256xf32> to vector<8x256xf32>
    %27 = arith.truncf %25 : vector<8x64xf32> to vector<8x64xbf16>
    %cst_9 = arith.constant dense<0.000000e+00> : vector<8x256xf32>
    %28 = tpu.matmul %27, %1, %cst_9 {dimension_numbers = #tpu.dot_dimension_numbers<[1], [0], [0], [1], [0, 0, 1, 1], [], []>} : vector<8x64xbf16>, vector<64x256xbf16>, vector<8x256xf32> -> vector<8x256xf32>
    %29 = arith.addf %26, %28 : vector<8x256xf32>
    %30 = arith.negf %29 : vector<8x256xf32>
    %31 = math.exp %30 : vector<8x256xf32>
    %cst_10 = arith.constant 1.000000e+00 : f32
    %32 = vector.broadcast %cst_10 : f32 to vector<8x256xf32>
    %33 = arith.addf %32, %31 : vector<8x256xf32>
    %34 = arith.divf %32, %33 : vector<8x256xf32>
    %35 = vector.extract_strided_slice %34 {offsets = [0, 0], sizes = [8, 64], strides = [1, 1]} : vector<8x256xf32> to vector<8x64xf32>
    %36 = vector.extract_strided_slice %34 {offsets = [0, 64], sizes = [8, 64], strides = [1, 1]} : vector<8x256xf32> to vector<8x64xf32>
    %37 = vector.extract_strided_slice %34 {offsets = [0, 192], sizes = [8, 64], strides = [1, 1]} : vector<8x256xf32> to vector<8x64xf32>
    %38 = vector.extract_strided_slice %29 {offsets = [0, 128], sizes = [8, 64], strides = [1, 1]} : vector<8x256xf32> to vector<8x64xf32>
    %39 = math.tanh %38 : vector<8x64xf32>
    %40 = arith.mulf %36, %23 : vector<8x64xf32>
    %41 = arith.mulf %35, %39 : vector<8x64xf32>
    %42 = arith.addf %40, %41 : vector<8x64xf32>
    %43 = math.tanh %42 : vector<8x64xf32>
    %44 = arith.mulf %37, %43 : vector<8x64xf32>
    %45 = vector.extract_strided_slice %4 {offsets = [16, 0], sizes = [8, 256], strides = [1, 1]} : vector<64x256xf32> to vector<8x256xf32>
    %46 = arith.truncf %44 : vector<8x64xf32> to vector<8x64xbf16>
    %cst_11 = arith.constant dense<0.000000e+00> : vector<8x256xf32>
    %47 = tpu.matmul %46, %1, %cst_11 {dimension_numbers = #tpu.dot_dimension_numbers<[1], [0], [0], [1], [0, 0, 1, 1], [], []>} : vector<8x64xbf16>, vector<64x256xbf16>, vector<8x256xf32> -> vector<8x256xf32>
    %48 = arith.addf %45, %47 : vector<8x256xf32>
    %49 = arith.negf %48 : vector<8x256xf32>
    %50 = math.exp %49 : vector<8x256xf32>
    %cst_12 = arith.constant 1.000000e+00 : f32
    %51 = vector.broadcast %cst_12 : f32 to vector<8x256xf32>
    %52 = arith.addf %51, %50 : vector<8x256xf32>
    %53 = arith.divf %51, %52 : vector<8x256xf32>
    %54 = vector.extract_strided_slice %53 {offsets = [0, 0], sizes = [8, 64], strides = [1, 1]} : vector<8x256xf32> to vector<8x64xf32>
    %55 = vector.extract_strided_slice %53 {offsets = [0, 64], sizes = [8, 64], strides = [1, 1]} : vector<8x256xf32> to vector<8x64xf32>
    %56 = vector.extract_strided_slice %53 {offsets = [0, 192], sizes = [8, 64], strides = [1, 1]} : vector<8x256xf32> to vector<8x64xf32>
    %57 = vector.extract_strided_slice %48 {offsets = [0, 128], sizes = [8, 64], strides = [1, 1]} : vector<8x256xf32> to vector<8x64xf32>
    %58 = math.tanh %57 : vector<8x64xf32>
    %59 = arith.mulf %55, %42 : vector<8x64xf32>
    %60 = arith.mulf %54, %58 : vector<8x64xf32>
    %61 = arith.addf %59, %60 : vector<8x64xf32>
    %62 = math.tanh %61 : vector<8x64xf32>
    %63 = arith.mulf %56, %62 : vector<8x64xf32>
    %64 = vector.extract_strided_slice %4 {offsets = [24, 0], sizes = [8, 256], strides = [1, 1]} : vector<64x256xf32> to vector<8x256xf32>
    %65 = arith.truncf %63 : vector<8x64xf32> to vector<8x64xbf16>
    %cst_13 = arith.constant dense<0.000000e+00> : vector<8x256xf32>
    %66 = tpu.matmul %65, %1, %cst_13 {dimension_numbers = #tpu.dot_dimension_numbers<[1], [0], [0], [1], [0, 0, 1, 1], [], []>} : vector<8x64xbf16>, vector<64x256xbf16>, vector<8x256xf32> -> vector<8x256xf32>
    %67 = arith.addf %64, %66 : vector<8x256xf32>
    %68 = arith.negf %67 : vector<8x256xf32>
    %69 = math.exp %68 : vector<8x256xf32>
    %cst_14 = arith.constant 1.000000e+00 : f32
    %70 = vector.broadcast %cst_14 : f32 to vector<8x256xf32>
    %71 = arith.addf %70, %69 : vector<8x256xf32>
    %72 = arith.divf %70, %71 : vector<8x256xf32>
    %73 = vector.extract_strided_slice %72 {offsets = [0, 0], sizes = [8, 64], strides = [1, 1]} : vector<8x256xf32> to vector<8x64xf32>
    %74 = vector.extract_strided_slice %72 {offsets = [0, 64], sizes = [8, 64], strides = [1, 1]} : vector<8x256xf32> to vector<8x64xf32>
    %75 = vector.extract_strided_slice %72 {offsets = [0, 192], sizes = [8, 64], strides = [1, 1]} : vector<8x256xf32> to vector<8x64xf32>
    %76 = vector.extract_strided_slice %67 {offsets = [0, 128], sizes = [8, 64], strides = [1, 1]} : vector<8x256xf32> to vector<8x64xf32>
    %77 = math.tanh %76 : vector<8x64xf32>
    %78 = arith.mulf %74, %61 : vector<8x64xf32>
    %79 = arith.mulf %73, %77 : vector<8x64xf32>
    %80 = arith.addf %78, %79 : vector<8x64xf32>
    %81 = math.tanh %80 : vector<8x64xf32>
    %82 = arith.mulf %75, %81 : vector<8x64xf32>
    %83 = vector.extract_strided_slice %4 {offsets = [32, 0], sizes = [8, 256], strides = [1, 1]} : vector<64x256xf32> to vector<8x256xf32>
    %84 = arith.truncf %82 : vector<8x64xf32> to vector<8x64xbf16>
    %cst_15 = arith.constant dense<0.000000e+00> : vector<8x256xf32>
    %85 = tpu.matmul %84, %1, %cst_15 {dimension_numbers = #tpu.dot_dimension_numbers<[1], [0], [0], [1], [0, 0, 1, 1], [], []>} : vector<8x64xbf16>, vector<64x256xbf16>, vector<8x256xf32> -> vector<8x256xf32>
    %86 = arith.addf %83, %85 : vector<8x256xf32>
    %87 = arith.negf %86 : vector<8x256xf32>
    %88 = math.exp %87 : vector<8x256xf32>
    %cst_16 = arith.constant 1.000000e+00 : f32
    %89 = vector.broadcast %cst_16 : f32 to vector<8x256xf32>
    %90 = arith.addf %89, %88 : vector<8x256xf32>
    %91 = arith.divf %89, %90 : vector<8x256xf32>
    %92 = vector.extract_strided_slice %91 {offsets = [0, 0], sizes = [8, 64], strides = [1, 1]} : vector<8x256xf32> to vector<8x64xf32>
    %93 = vector.extract_strided_slice %91 {offsets = [0, 64], sizes = [8, 64], strides = [1, 1]} : vector<8x256xf32> to vector<8x64xf32>
    %94 = vector.extract_strided_slice %91 {offsets = [0, 192], sizes = [8, 64], strides = [1, 1]} : vector<8x256xf32> to vector<8x64xf32>
    %95 = vector.extract_strided_slice %86 {offsets = [0, 128], sizes = [8, 64], strides = [1, 1]} : vector<8x256xf32> to vector<8x64xf32>
    %96 = math.tanh %95 : vector<8x64xf32>
    %97 = arith.mulf %93, %80 : vector<8x64xf32>
    %98 = arith.mulf %92, %96 : vector<8x64xf32>
    %99 = arith.addf %97, %98 : vector<8x64xf32>
    %100 = math.tanh %99 : vector<8x64xf32>
    %101 = arith.mulf %94, %100 : vector<8x64xf32>
    %102 = vector.extract_strided_slice %4 {offsets = [40, 0], sizes = [8, 256], strides = [1, 1]} : vector<64x256xf32> to vector<8x256xf32>
    %103 = arith.truncf %101 : vector<8x64xf32> to vector<8x64xbf16>
    %cst_17 = arith.constant dense<0.000000e+00> : vector<8x256xf32>
    %104 = tpu.matmul %103, %1, %cst_17 {dimension_numbers = #tpu.dot_dimension_numbers<[1], [0], [0], [1], [0, 0, 1, 1], [], []>} : vector<8x64xbf16>, vector<64x256xbf16>, vector<8x256xf32> -> vector<8x256xf32>
    %105 = arith.addf %102, %104 : vector<8x256xf32>
    %106 = arith.negf %105 : vector<8x256xf32>
    %107 = math.exp %106 : vector<8x256xf32>
    %cst_18 = arith.constant 1.000000e+00 : f32
    %108 = vector.broadcast %cst_18 : f32 to vector<8x256xf32>
    %109 = arith.addf %108, %107 : vector<8x256xf32>
    %110 = arith.divf %108, %109 : vector<8x256xf32>
    %111 = vector.extract_strided_slice %110 {offsets = [0, 0], sizes = [8, 64], strides = [1, 1]} : vector<8x256xf32> to vector<8x64xf32>
    %112 = vector.extract_strided_slice %110 {offsets = [0, 64], sizes = [8, 64], strides = [1, 1]} : vector<8x256xf32> to vector<8x64xf32>
    %113 = vector.extract_strided_slice %110 {offsets = [0, 192], sizes = [8, 64], strides = [1, 1]} : vector<8x256xf32> to vector<8x64xf32>
    %114 = vector.extract_strided_slice %105 {offsets = [0, 128], sizes = [8, 64], strides = [1, 1]} : vector<8x256xf32> to vector<8x64xf32>
    %115 = math.tanh %114 : vector<8x64xf32>
    %116 = arith.mulf %112, %99 : vector<8x64xf32>
    %117 = arith.mulf %111, %115 : vector<8x64xf32>
    %118 = arith.addf %116, %117 : vector<8x64xf32>
    %119 = math.tanh %118 : vector<8x64xf32>
    %120 = arith.mulf %113, %119 : vector<8x64xf32>
    %121 = vector.extract_strided_slice %4 {offsets = [48, 0], sizes = [8, 256], strides = [1, 1]} : vector<64x256xf32> to vector<8x256xf32>
    %122 = arith.truncf %120 : vector<8x64xf32> to vector<8x64xbf16>
    %cst_19 = arith.constant dense<0.000000e+00> : vector<8x256xf32>
    %123 = tpu.matmul %122, %1, %cst_19 {dimension_numbers = #tpu.dot_dimension_numbers<[1], [0], [0], [1], [0, 0, 1, 1], [], []>} : vector<8x64xbf16>, vector<64x256xbf16>, vector<8x256xf32> -> vector<8x256xf32>
    %124 = arith.addf %121, %123 : vector<8x256xf32>
    %125 = arith.negf %124 : vector<8x256xf32>
    %126 = math.exp %125 : vector<8x256xf32>
    %cst_20 = arith.constant 1.000000e+00 : f32
    %127 = vector.broadcast %cst_20 : f32 to vector<8x256xf32>
    %128 = arith.addf %127, %126 : vector<8x256xf32>
    %129 = arith.divf %127, %128 : vector<8x256xf32>
    %130 = vector.extract_strided_slice %129 {offsets = [0, 0], sizes = [8, 64], strides = [1, 1]} : vector<8x256xf32> to vector<8x64xf32>
    %131 = vector.extract_strided_slice %129 {offsets = [0, 64], sizes = [8, 64], strides = [1, 1]} : vector<8x256xf32> to vector<8x64xf32>
    %132 = vector.extract_strided_slice %129 {offsets = [0, 192], sizes = [8, 64], strides = [1, 1]} : vector<8x256xf32> to vector<8x64xf32>
    %133 = vector.extract_strided_slice %124 {offsets = [0, 128], sizes = [8, 64], strides = [1, 1]} : vector<8x256xf32> to vector<8x64xf32>
    %134 = math.tanh %133 : vector<8x64xf32>
    %135 = arith.mulf %131, %118 : vector<8x64xf32>
    %136 = arith.mulf %130, %134 : vector<8x64xf32>
    %137 = arith.addf %135, %136 : vector<8x64xf32>
    %138 = math.tanh %137 : vector<8x64xf32>
    %139 = arith.mulf %132, %138 : vector<8x64xf32>
    %140 = vector.extract_strided_slice %4 {offsets = [56, 0], sizes = [8, 256], strides = [1, 1]} : vector<64x256xf32> to vector<8x256xf32>
    %141 = arith.truncf %139 : vector<8x64xf32> to vector<8x64xbf16>
    %cst_21 = arith.constant dense<0.000000e+00> : vector<8x256xf32>
    %142 = tpu.matmul %141, %1, %cst_21 {dimension_numbers = #tpu.dot_dimension_numbers<[1], [0], [0], [1], [0, 0, 1, 1], [], []>} : vector<8x64xbf16>, vector<64x256xbf16>, vector<8x256xf32> -> vector<8x256xf32>
    %143 = arith.addf %140, %142 : vector<8x256xf32>
    %144 = arith.negf %143 : vector<8x256xf32>
    %145 = math.exp %144 : vector<8x256xf32>
    %cst_22 = arith.constant 1.000000e+00 : f32
    %146 = vector.broadcast %cst_22 : f32 to vector<8x256xf32>
    %147 = arith.addf %146, %145 : vector<8x256xf32>
    %148 = arith.divf %146, %147 : vector<8x256xf32>
    %149 = vector.extract_strided_slice %148 {offsets = [0, 0], sizes = [8, 64], strides = [1, 1]} : vector<8x256xf32> to vector<8x64xf32>
    %150 = vector.extract_strided_slice %148 {offsets = [0, 64], sizes = [8, 64], strides = [1, 1]} : vector<8x256xf32> to vector<8x64xf32>
    %151 = vector.extract_strided_slice %148 {offsets = [0, 192], sizes = [8, 64], strides = [1, 1]} : vector<8x256xf32> to vector<8x64xf32>
    %152 = vector.extract_strided_slice %143 {offsets = [0, 128], sizes = [8, 64], strides = [1, 1]} : vector<8x256xf32> to vector<8x64xf32>
    %153 = math.tanh %152 : vector<8x64xf32>
    %154 = arith.mulf %150, %137 : vector<8x64xf32>
    %155 = arith.mulf %149, %153 : vector<8x64xf32>
    %156 = arith.addf %154, %155 : vector<8x64xf32>
    %157 = math.tanh %156 : vector<8x64xf32>
    %158 = arith.mulf %151, %157 : vector<8x64xf32>
    %c0_23 = arith.constant 0 : index
    %c0_24 = arith.constant 0 : index
    %159 = vector.load %arg3[%c0_23, %c0_24] : memref<1x64xf32, #tpu.memory_space<vmem>>, vector<1x64xf32>
    %160 = vector.broadcast %159 : vector<1x64xf32> to vector<8x64xf32>
    %161 = arith.mulf %158, %160 : vector<8x64xf32>
    %cst_25 = arith.constant dense<0.000000e+00> : vector<8xf32>
    %162 = vector.multi_reduction <add>, %161, %cst_25 [1] : vector<8x64xf32> to vector<8xf32>
    %163 = vector.shape_cast %162 : vector<8xf32> to vector<8x1xf32>
    %c0_26 = arith.constant 0 : index
    %c0_27 = arith.constant 0 : index
    %164 = vector.load %arg4[%c0_26, %c0_27] : memref<1x1xf32, #tpu.memory_space<vmem>>, vector<1x1xf32>
    %165 = vector.broadcast %164 : vector<1x1xf32> to vector<8x1xf32>
    %166 = arith.addf %163, %165 : vector<8x1xf32>
    %167 = arith.negf %166 : vector<8x1xf32>
    %168 = math.exp %167 : vector<8x1xf32>
    %cst_28 = arith.constant 1.000000e+00 : f32
    %169 = vector.broadcast %cst_28 : f32 to vector<8x1xf32>
    %170 = arith.addf %169, %168 : vector<8x1xf32>
    %171 = arith.divf %169, %170 : vector<8x1xf32>
    %c0_29 = arith.constant 0 : index
    %c0_30 = arith.constant 0 : index
    %c0_31 = arith.constant 0 : index
    %172 = vector.load %arg5[%c0_29, %c0_30, %c0_31] : memref<1x8x1xf32, #tpu.memory_space<vmem>>, vector<1x8x1xf32>
    %173 = vector.shape_cast %172 : vector<1x8x1xf32> to vector<8x1xf32>
    %174 = vector.shape_cast %171 : vector<8x1xf32> to vector<1x8x1xf32>
    tpu.vector_store %arg5[%c0_29, %c0_30, %c0_31], %174 {strides = array<i32>} : memref<1x8x1xf32, #tpu.memory_space<vmem>>, vector<1x8x1xf32>,
    return
  }
  func.func @transform_0(%arg0: i32) -> (i32, i32, i32) {
    %c0_i32 = arith.constant 0 : i32
    %c0_i32_0 = arith.constant 0 : i32
    %c0_i32_1 = arith.constant 0 : i32
    return %arg0, %c0_i32, %c0_i32_0 : i32, i32, i32
  }
  func.func @transform_1(%arg0: i32) -> (i32, i32) {
    %c0_i32 = arith.constant 0 : i32
    %c0_i32_0 = arith.constant 0 : i32
    %c0_i32_1 = arith.constant 0 : i32
    return %c0_i32, %c0_i32_0 : i32, i32
  }
  func.func @transform_2(%arg0: i32) -> (i32, i32) {
    %c0_i32 = arith.constant 0 : i32
    %c0_i32_0 = arith.constant 0 : i32
    %c0_i32_1 = arith.constant 0 : i32
    return %c0_i32, %c0_i32_0 : i32, i32
  }
  func.func @transform_3(%arg0: i32) -> (i32, i32) {
    %c0_i32 = arith.constant 0 : i32
    %c0_i32_0 = arith.constant 0 : i32
    %c0_i32_1 = arith.constant 0 : i32
    return %c0_i32, %c0_i32_0 : i32, i32
  }
  func.func @transform_4(%arg0: i32) -> (i32, i32, i32) {
    %c0_i32 = arith.constant 0 : i32
    %c0_i32_0 = arith.constant 0 : i32
    %c0_i32_1 = arith.constant 0 : i32
    return %arg0, %c0_i32, %c0_i32_0 : i32, i32, i32
  }
}

</mosaic_0001>

<bundles_post_ra>
// kernel: tpu_custom_call.1
= control target key start
LH: loop header
LB: loop body
LE: loop exit
PB: predicated region body
PF: predicated region fallthrough
CT: control target
= control target key end

     0   :  { %s1209_s0 = inlined_call_operand.vmem [shape: bf16[1,64,16], index: 0, kind: input, shape index: {}]   ;;  %s1210_s1 = inlined_call_operand.hbm [shape: bf16[80,256], index: 1, kind: input, shape index: {}]   ;;  %s1211_s2 = inlined_call_operand.vmem [shape: f32[1,64], index: 2, kind: input, shape index: {}]   ;;  %s1212_s3 = inlined_call_operand.<no memory space> [shape: f32[1,1], index: 3, kind: input, shape index: {}]   ;;  %s1213_s4 = inlined_call_operand.vmem [shape: f32[1,8,1], index: 4, kind: output, shape index: {}]  }
   0x1   :  { %v9_v0 = vstv %s1212_s3 }
   0x2   :  { %10 = vst [vmem:[#allocation2] sm:$0x1] %v9_v0 }
   0x3   :  { %11 = vsyncpa [#allocation4], 0  ;;  %s1009_s17 = smov [#allocation3]  }
   0x4   :  { %s19_s18 = sshll.u32 %s1009_s17, 4  ;;  %s20_s18 = int_to_ptr.vmem [resolvable:$true] %s19_s18 }
   0x5   :  { %s995_s19 = scalar_lea.vmem %s20_s18, 1280  ;;  %p1000_p1 = scmp.lt.s32.totalorder %s20_s18, %s20_s18 }
   0x6   :  { %p996_p0 = scmp.ne.s32.totalorder %s20_s18, %s995_s19  ;;  %p1001_p2 = scmp.lt.s32.totalorder %s995_s19, %s995_s19 }
   0x8   :  { %p1002_p3 = por %p1001_p2, %p1000_p1 }
   0xa   :  { %p1003_p4 = pnand %p1002_p3, %p996_p0 }
   0xc   :  { %1006 = shalt.err (!%p1003_p4)
}
   0xd   :  { %s1010_s20 = smov 128   ;;  %s1011_s21 = smov 8  }
   0xe   :  { %25 = dma.hbm_to_vmem [thread:$0]  %s1210_s1, 1280, %s20_s18, [#allocation4], %s1010_s20, %s1010_s20, %s1011_s21  }
   0xf   :  { %1007 = dma.done.wait [#allocation4], 1280  }
  0x10   :  { %1008 = vsyncadd [#allocation4], 4294966016  ;;  %v1012_v1 = vmov 0   ;;  %v1047_v2 = vld [vmem:[#allocation3 + $0x44] ss:$8 sps:$4 sm:$0xff]   ;;  %vm82_vm0 = vcmask 130048  }
  0x11   :  { %127 = vmatprep.mubr.bf16.mxu0 %v1012_v1  ;;  %244 = vmatprep.mubr.bf16.mxu1 %v1012_v1  ;;  %v1049_v3 = vld [vmem:[#allocation3 + $0x40] ss:$8 sps:$4 sm:$0xff]   ;;  %v1052_v4 = vld [vmem:[#allocation3 + $0x34] ss:$8 sps:$4 sm:$0xff]   ;;  %v1054_v5 = vld [vmem:[#allocation3 + $0x30] ss:$8 sps:$4 sm:$0xff]  }
  0x12   :  { %220 = vmatprep.subr.bf16.mxu1 %v1047_v2  ;;  %v874_v6 = vld [vmem:[#allocation3 + $0x4] ss:$8 sps:$4 sm:$0xff]   ;;  %v876_v7 = vld [vmem:[#allocation3] ss:$8 sps:$4 sm:$0xff]   ;;  %v1066_v11 = vld [vmem:[#allocation3 + $0x14] ss:$8 sps:$4 sm:$0xff]  }
  0x13   :  { %221 = vmatpush1.bf16.msra.mxu1 %v1049_v3  ;;  %v1058_v8 = vld [vmem:[#allocation3 + $0x24] ss:$8 sps:$4 sm:$0xff]   ;;  %109 = vmatprep.subr.bf16.mxu0 %v874_v6  ;;  %v1064_v10 = vld [vmem:[#allocation3 + $0x20] ss:$8 sps:$4 sm:$0xff]   ;;  %v1074_v12 = vld [vmem:[#allocation3 + $0x10] ss:$8 sps:$4 sm:$0xff]  }
  0x14   :  { %222 = vmatprep.subr.bf16.mxu1 %v1052_v4  ;;  %110 = vmatpush1.bf16.msra.mxu0 %v876_v7  ;;  %v880_v9 = vld [vmem:[%s1209_s0] sm:$0xff]   ;;  %s1013_s24 = smov 64   ;;  %vm208_vm1 = vcmask 523264   ;;  %v884_v52 = vld [vmem:[%s1209_s0 + $0x8] sm:$0xff]   ;;  %v885_v53 = vld [vmem:[%s1209_s0 + $0x10] sm:$0xff]   ;;  %vm812_vm2 = vcmask 7168  }
  0x15   :  { %364 = vmatprep.subr.bf16.mxu0 %v1047_v2  ;;  %v886_v54 = vld [vmem:[%s1209_s0 + $0x18] sm:$0xff]  }
  0x17   :  { %223 = vmatpush1.bf16.msra.mxu1 %v1054_v5  ;;  %825 = vmatmul.mubr.msk.bf16.vlgmr.msra.gmra.mxu0 %vm82_vm0, %v880_v9 }
  0x18   :  { %224 = vmatprep.subr.bf16.mxu1 %v1058_v8  ;;  %365 = vmatpush1.bf16.msra.mxu0 %v1049_v3 }
  0x19   :  { %137 = vmatprep.mubr.bf16.mxu0 %v1012_v1  ;;  %366 = vmatprep.subr.bf16.mxu0 %v1052_v4 }
  0x1b   :  { %225 = vmatpush1.bf16.msra.mxu1 %v1064_v10 }
  0x1c   :  { %226 = vmatprep.subr.bf16.mxu1 %v1066_v11  ;;  %367 = vmatpush1.bf16.msra.mxu0 %v1054_v5 }
  0x1d   :  { %368 = vmatprep.subr.bf16.mxu0 %v1058_v8 }
  0x1f   :  { %227 = vmatpush1.bf16.msra.mxu1 %v1074_v12  ;;  %826 = vmatmul.mubr.msk.bf16.gmra.mxu0 %vm82_vm0, %v884_v52 }
  0x20   :  { %292 = vmatprep.subr.bf16.mxu1 %v1047_v2  ;;  %369 = vmatpush1.bf16.msra.mxu0 %v1064_v10 }
  0x21   :  { %370 = vmatprep.subr.bf16.mxu0 %v1066_v11  ;;  %147 = vmatprep.mubr.bf16.mxu0 %v1012_v1 }
  0x22   :  { %245 = vmatmul.mubr.bf16.vlgmr.msra.gmra.mxu1 %v1012_v1 }
  0x23   :  { %293 = vmatpush1.bf16.msra.mxu1 %v1049_v3  ;;  %316 = vmatprep.mubr.bf16.mxu1 %v1012_v1 }
  0x24   :  { %294 = vmatprep.subr.bf16.mxu1 %v1052_v4  ;;  %371 = vmatpush1.bf16.msra.mxu0 %v1074_v12 }
  0x25   :  { %508 = vmatprep.subr.bf16.mxu0 %v1047_v2 }
  0x27   :  { %295 = vmatpush1.bf16.msra.mxu1 %v1054_v5  ;;  %827 = vmatmul.mubr.msk.bf16.gmra.mxu0 %vm82_vm0, %v885_v53 }
  0x28   :  { %296 = vmatprep.subr.bf16.mxu1 %v1058_v8  ;;  %157 = vmatprep.mubr.bf16.mxu0 %v1012_v1 }
  0x2b   :  { %297 = vmatpush1.bf16.msra.mxu1 %v1064_v10 }
  0x2c   :  { %298 = vmatprep.subr.bf16.mxu1 %v1066_v11 }
  0x2f   :  { %299 = vmatpush1.bf16.msra.mxu1 %v1074_v12  ;;  %828 = vmatmul.mubr.msk.bf16.gmra.mxu0 %vm82_vm0, %v886_v54 }
  0x30   :  { %436 = vmatprep.subr.bf16.mxu1 %v1047_v2  ;;  %388 = vmatprep.mubr.bf16.mxu0 %v1012_v1 }
  0xd7   :  { %v129_v13 = vpop.f32.mrf.mxu0 }
  0xd9   :  { %v131_v20 = vpop.f32.mrf.mxu0 }
  0xdb   :  { %v133_v38 = vpop.f32.mrf.mxu0 }
  0xdd   :  { %v135_v45 = vpop.f32.mrf.mxu0 }
  0xdf   :  { %v139_v7 = vpop.f32.mrf.mxu0 }
  0xe1   :  { %v141_v9 = vpop.f32.mrf.mxu0 }
  0xe2   :  { %v246_v14 = vpop.f32.mrf.mxu1 }
  0xe3   :  { %v253_v15 = vadd.f32 %v246_v14, %v129_v13  ;;  %v143_v13 = vpop.f32.mrf.mxu0 }
  0xe4   :  { %v248_v16 = vpop.f32.mrf.mxu1 }
  0xe5   :  { %v837_v17 = vmul.f32 -1.442695, %v253_v15  ;;  %v254_v21 = vadd.f32 %v248_v16, %v131_v20  ;;  %v145_v14 = vpop.f32.mrf.mxu0 }
  0xe6   :  { %v250_v18 = vpop.f32.mrf.mxu1 }
  0xe7   :  { %887 = vpow2.f32 %v837_v17  ;;  %v838_v27 = vmul.f32 -1.442695, %v254_v21  ;;  %v1135_v15 = vpop.f32.mrf.mxu0 }
  0xe8   :  { %v251_v19 = vpop.f32.mrf.mxu1  ;;  %889 = vtanh.f32 %v254_v21 }
  0xe9   :  { %v1137_v16 = vpop.f32.mrf.mxu0 }
  0xeb   :  { %v1139_v17 = vpop.f32.mrf.mxu0 }
  0xed   :  { %v1141_v18 = vpop.f32.mrf.mxu0 }
  0xef   :  { %v1143_v19 = vpop.f32.mrf.mxu0 }
  0xf1   :  { %v1145_v20 = vpop.f32.mrf.mxu0 }
  0xf3   :  { %v1147_v21 = vpop.f32.mrf.mxu0 }
  0xf4   :  { %v888_v22 = vpop.eup %887 }
  0xf5   :  { %v261_v23 = vadd.f32 1.0, %v888_v22  ;;  %v890_v24 = vpop.eup %889  ;;  %v1149_v22 = vpop.f32.mrf.mxu0 }
  0xf7   :  { %891 = vrcp.f32 %v261_v23 }
  0xf8   :  { %893 = vpow2.f32 %v838_v27 }
 0x104   :  { %v892_v25 = vpop.eup %891 }
 0x105   :  { %v269_v26 = vmul.f32 %v892_v25, %v890_v24  ;;  %v894_v28 = vpop.eup %893  ;;  %v268_v30 = vmul.f32 0.0, %v892_v25 }
 0x106   :  { %v262_v29 = vadd.f32 1.0, %v894_v28 }
 0x107   :  { %271 = vrot.lane.b32.xlu0 %v269_v26, %s1013_s24 }
 0x108   :  { %895 = vrcp.f32 %v262_v29 }
 0x115   :  { %v896_v33 = vpop.eup %895 }
 0x179   :  { %v272_v31 = vpop.permute.xlu0 %271 }
 0x17a   :  { %v274_v32 = vadd.f32 %v272_v31, %v268_v30 }
 0x17c   :  { %897 = vtanh.f32 %v274_v32 }
 0x189   :  { %v898_v34 = vpop.eup %897 }
 0x18a   :  { %v276_v35 = vmul.f32 %v898_v34, %v896_v33 }
 0x18c   :  { %v277_v36 = vpack.c.bf16 %v276_v35, %v276_v35 }
 0x18e   :  { %279 = vrot.lane.b32.xlu0 %v277_v36, %s1013_s24 }
 0x200   :  { %v280_v37 = vpop.permute.xlu0 %279 }
 0x201   :  { %839 = vmatmul.mubr.msk.bf16.vlgmr.msra.gmra.mxu1 %vm208_vm1, %v280_v37 }
 0x202   :  { %437 = vmatpush1.bf16.msra.mxu1 %v1049_v3  ;;  %460 = vmatprep.mubr.bf16.mxu1 %v1012_v1 }
 0x203   :  { %438 = vmatprep.subr.bf16.mxu1 %v1052_v4 }
 0x206   :  { %439 = vmatpush1.bf16.msra.mxu1 %v1054_v5 }
 0x207   :  { %440 = vmatprep.subr.bf16.mxu1 %v1058_v8 }
 0x20a   :  { %441 = vmatpush1.bf16.msra.mxu1 %v1064_v10 }
 0x20b   :  { %442 = vmatprep.subr.bf16.mxu1 %v1066_v11 }
 0x20e   :  { %443 = vmatpush1.bf16.msra.mxu1 %v1074_v12 }
 0x20f   :  { %580 = vmatprep.subr.bf16.mxu1 %v1047_v2 }
 0x2c1   :  { %v318_v39 = vpop.f32.mrf.mxu1 }
 0x2c2   :  { %v325_v40 = vadd.f32 %v318_v39, %v133_v38 }
 0x2c3   :  { %v320_v41 = vpop.f32.mrf.mxu1 }
 0x2c4   :  { %v840_v42 = vmul.f32 -1.442695, %v325_v40  ;;  %v326_v46 = vadd.f32 %v320_v41, %v135_v45 }
 0x2c5   :  { %v322_v43 = vpop.f32.mrf.mxu1 }
 0x2c6   :  { %899 = vpow2.f32 %v840_v42  ;;  %v841_v55 = vmul.f32 -1.442695, %v326_v46 }
 0x2c7   :  { %v323_v44 = vpop.f32.mrf.mxu1  ;;  %901 = vtanh.f32 %v326_v46 }
 0x2d3   :  { %v900_v47 = vpop.eup %899 }
 0x2d4   :  { %v333_v48 = vadd.f32 1.0, %v900_v47  ;;  %v902_v49 = vpop.eup %901 }
 0x2d6   :  { %903 = vrcp.f32 %v333_v48 }
 0x2d7   :  { %905 = vpow2.f32 %v841_v55 }
 0x2e3   :  { %v904_v50 = vpop.eup %903 }
 0x2e4   :  { %v341_v51 = vmul.f32 %v904_v50, %v902_v49  ;;  %v906_v56 = vpop.eup %905  ;;  %v340_v58 = vmul.f32 %v904_v50, %v274_v32 }
 0x2e5   :  { %v334_v57 = vadd.f32 1.0, %v906_v56 }
 0x2e6   :  { %343 = vrot.lane.b32.xlu1 %v341_v51, %s1013_s24 }
 0x2e7   :  { %907 = vrcp.f32 %v334_v57 }
 0x2f4   :  { %v908_v61 = vpop.eup %907 }
 0x358   :  { %v344_v59 = vpop.permute.xlu1 %343 }
 0x359   :  { %v346_v60 = vadd.f32 %v344_v59, %v340_v58 }
 0x35b   :  { %909 = vtanh.f32 %v346_v60 }
 0x368   :  { %v910_v62 = vpop.eup %909 }
 0x369   :  { %v348_v63 = vmul.f32 %v910_v62, %v908_v61 }
 0x36b   :  { %v349_v0 = vpack.c.bf16 %v348_v63, %v348_v63 }
 0x36d   :  { %351 = vrot.lane.b32.xlu1 %v349_v0, %s1013_s24 }
 0x3df   :  { %v352_v6 = vpop.permute.xlu1 %351 }
 0x3e0   :  { %842 = vmatmul.mubr.msk.bf16.vlgmr.msra.gmra.mxu0 %vm208_vm1, %v352_v6 }
 0x3e1   :  { %509 = vmatpush1.bf16.msra.mxu0 %v1049_v3  ;;  %532 = vmatprep.mubr.bf16.mxu0 %v1012_v1 }
 0x3e2   :  { %510 = vmatprep.subr.bf16.mxu0 %v1052_v4 }
 0x3e5   :  { %511 = vmatpush1.bf16.msra.mxu0 %v1054_v5 }
 0x3e6   :  { %512 = vmatprep.subr.bf16.mxu0 %v1058_v8 }
 0x3e9   :  { %513 = vmatpush1.bf16.msra.mxu0 %v1064_v10 }
 0x3ea   :  { %514 = vmatprep.subr.bf16.mxu0 %v1066_v11 }
 0x3ed   :  { %515 = vmatpush1.bf16.msra.mxu0 %v1074_v12 }
 0x3ee   :  { %652 = vmatprep.subr.bf16.mxu0 %v1047_v2 }
 0x4a0   :  { %v390_v23 = vpop.f32.mrf.mxu0 }
 0x4a1   :  { %v397_v24 = vadd.f32 %v390_v23, %v139_v7 }
 0x4a2   :  { %v392_v25 = vpop.f32.mrf.mxu0 }
 0x4a3   :  { %v843_v26 = vmul.f32 -1.442695, %v397_v24  ;;  %v398_v29 = vadd.f32 %v392_v25, %v141_v9 }
 0x4a4   :  { %v394_v27 = vpop.f32.mrf.mxu0 }
 0x4a5   :  { %911 = vpow2.f32 %v843_v26  ;;  %v844_v35 = vmul.f32 -1.442695, %v398_v29 }
 0x4a6   :  { %v395_v28 = vpop.f32.mrf.mxu0  ;;  %913 = vtanh.f32 %v398_v29 }
 0x4b2   :  { %v912_v30 = vpop.eup %911 }
 0x4b3   :  { %v405_v31 = vadd.f32 1.0, %v912_v30  ;;  %v914_v32 = vpop.eup %913 }
 0x4b5   :  { %915 = vrcp.f32 %v405_v31 }
 0x4b6   :  { %917 = vpow2.f32 %v844_v35 }
 0x4c2   :  { %v916_v33 = vpop.eup %915 }
 0x4c3   :  { %v413_v34 = vmul.f32 %v916_v33, %v914_v32  ;;  %v918_v36 = vpop.eup %917  ;;  %v412_v38 = vmul.f32 %v916_v33, %v346_v60 }
 0x4c4   :  { %v406_v37 = vadd.f32 1.0, %v918_v36 }
 0x4c5   :  { %415 = vrot.lane.b32.xlu0 %v413_v34, %s1013_s24 }
 0x4c6   :  { %919 = vrcp.f32 %v406_v37 }
 0x4d3   :  { %v920_v41 = vpop.eup %919 }
 0x537   :  { %v416_v39 = vpop.permute.xlu0 %415 }
 0x538   :  { %v418_v40 = vadd.f32 %v416_v39, %v412_v38 }
 0x53a   :  { %921 = vtanh.f32 %v418_v40 }
 0x547   :  { %v922_v42 = vpop.eup %921 }
 0x548   :  { %v420_v43 = vmul.f32 %v922_v42, %v920_v41 }
 0x54a   :  { %v421_v44 = vpack.c.bf16 %v420_v43, %v420_v43 }
 0x54c   :  { %423 = vrot.lane.b32.xlu1 %v421_v44, %s1013_s24 }
 0x5be   :  { %v424_v45 = vpop.permute.xlu1 %423 }
 0x5bf   :  { %845 = vmatmul.mubr.msk.bf16.vlgmr.msra.gmra.mxu1 %vm208_vm1, %v424_v45 }
 0x5c0   :  { %581 = vmatpush1.bf16.msra.mxu1 %v1049_v3  ;;  %604 = vmatprep.mubr.bf16.mxu1 %v1012_v1 }
 0x5c1   :  { %582 = vmatprep.subr.bf16.mxu1 %v1052_v4 }
 0x5c4   :  { %583 = vmatpush1.bf16.msra.mxu1 %v1054_v5 }
 0x5c5   :  { %584 = vmatprep.subr.bf16.mxu1 %v1058_v8 }
 0x5c8   :  { %585 = vmatpush1.bf16.msra.mxu1 %v1064_v10 }
 0x5c9   :  { %586 = vmatprep.subr.bf16.mxu1 %v1066_v11 }
 0x5cc   :  { %587 = vmatpush1.bf16.msra.mxu1 %v1074_v12 }
 0x5cd   :  { %724 = vmatprep.subr.bf16.mxu1 %v1047_v2 }
 0x67f   :  { %v462_v46 = vpop.f32.mrf.mxu1 }
 0x680   :  { %v469_v47 = vadd.f32 %v462_v46, %v143_v13 }
 0x681   :  { %v464_v48 = vpop.f32.mrf.mxu1 }
 0x682   :  { %v846_v49 = vmul.f32 -1.442695, %v469_v47  ;;  %v470_v52 = vadd.f32 %v464_v48, %v145_v14 }
 0x683   :  { %v466_v50 = vpop.f32.mrf.mxu1 }
 0x684   :  { %923 = vpow2.f32 %v846_v49  ;;  %v847_v58 = vmul.f32 -1.442695, %v470_v52 }
 0x685   :  { %v467_v51 = vpop.f32.mrf.mxu1  ;;  %925 = vtanh.f32 %v470_v52 }
 0x691   :  { %v924_v53 = vpop.eup %923 }
 0x692   :  { %v477_v54 = vadd.f32 1.0, %v924_v53  ;;  %v926_v55 = vpop.eup %925 }
 0x694   :  { %927 = vrcp.f32 %v477_v54 }
 0x695   :  { %929 = vpow2.f32 %v847_v58 }
 0x6a1   :  { %v928_v56 = vpop.eup %927 }
 0x6a2   :  { %v485_v57 = vmul.f32 %v928_v56, %v926_v55  ;;  %v930_v2 = vpop.eup %929  ;;  %v484_v60 = vmul.f32 %v928_v56, %v418_v40 }
 0x6a3   :  { %v478_v59 = vadd.f32 1.0, %v930_v2 }
 0x6a4   :  { %487 = vrot.lane.b32.xlu0 %v485_v57, %s1013_s24 }
 0x6a5   :  { %931 = vrcp.f32 %v478_v59 }
 0x6b2   :  { %v932_v63 = vpop.eup %931 }
 0x716   :  { %v488_v61 = vpop.permute.xlu0 %487 }
 0x717   :  { %v490_v62 = vadd.f32 %v488_v61, %v484_v60 }
 0x719   :  { %933 = vtanh.f32 %v490_v62 }
 0x726   :  { %v934_v0 = vpop.eup %933 }
 0x727   :  { %v492_v6 = vmul.f32 %v934_v0, %v932_v63 }
 0x729   :  { %v493_v7 = vpack.c.bf16 %v492_v6, %v492_v6 }
 0x72b   :  { %495 = vrot.lane.b32.xlu1 %v493_v7, %s1013_s24 }
 0x79d   :  { %v496_v9 = vpop.permute.xlu1 %495 }
 0x79e   :  { %848 = vmatmul.mubr.msk.bf16.vlgmr.msra.gmra.mxu0 %vm208_vm1, %v496_v9 }
 0x79f   :  { %653 = vmatpush1.bf16.msra.mxu0 %v1049_v3  ;;  %676 = vmatprep.mubr.bf16.mxu0 %v1012_v1 }
 0x7a0   :  { %654 = vmatprep.subr.bf16.mxu0 %v1052_v4 }
 0x7a3   :  { %655 = vmatpush1.bf16.msra.mxu0 %v1054_v5 }
 0x7a4   :  { %656 = vmatprep.subr.bf16.mxu0 %v1058_v8 }
 0x7a7   :  { %657 = vmatpush1.bf16.msra.mxu0 %v1064_v10 }
 0x7a8   :  { %658 = vmatprep.subr.bf16.mxu0 %v1066_v11 }
 0x7ab   :  { %659 = vmatpush1.bf16.msra.mxu0 %v1074_v12 }
 0x85e   :  { %v534_v13 = vpop.f32.mrf.mxu0 }
 0x85f   :  { %v541_v14 = vadd.f32 %v534_v13, %v1135_v15 }
 0x860   :  { %v536_v23 = vpop.f32.mrf.mxu0 }
 0x861   :  { %v849_v24 = vmul.f32 -1.442695, %v541_v14  ;;  %v542_v27 = vadd.f32 %v536_v23, %v1137_v16 }
 0x862   :  { %v538_v25 = vpop.f32.mrf.mxu0 }
 0x863   :  { %935 = vpow2.f32 %v849_v24  ;;  %v850_v33 = vmul.f32 -1.442695, %v542_v27 }
 0x864   :  { %v539_v26 = vpop.f32.mrf.mxu0  ;;  %937 = vtanh.f32 %v542_v27 }
 0x870   :  { %v936_v28 = vpop.eup %935 }
 0x871   :  { %v549_v29 = vadd.f32 1.0, %v936_v28  ;;  %v938_v30 = vpop.eup %937  ;;  %v860_v28 = vld [vmem:[%s1211_s2] ss:$0 sm:$0xff] }
 0x873   :  { %939 = vrcp.f32 %v549_v29 }
 0x874   :  { %941 = vpow2.f32 %v850_v33 }
 0x880   :  { %v940_v31 = vpop.eup %939 }
 0x881   :  { %v557_v32 = vmul.f32 %v940_v31, %v938_v30  ;;  %v942_v34 = vpop.eup %941  ;;  %v556_v35 = vmul.f32 %v940_v31, %v490_v62 }
 0x882   :  { %v550_v15 = vadd.f32 1.0, %v942_v34 }
 0x883   :  { %559 = vrot.lane.b32.xlu0 %v557_v32, %s1013_s24 }
 0x884   :  { %943 = vrcp.f32 %v550_v15 }
 0x891   :  { %v944_v38 = vpop.eup %943 }
 0x8f5   :  { %v560_v36 = vpop.permute.xlu0 %559 }
 0x8f6   :  { %v562_v37 = vadd.f32 %v560_v36, %v556_v35 }
 0x8f8   :  { %945 = vtanh.f32 %v562_v37 }
 0x905   :  { %v946_v16 = vpop.eup %945 }
 0x906   :  { %v564_v39 = vmul.f32 %v946_v16, %v944_v38 }
 0x908   :  { %v565_v40 = vpack.c.bf16 %v564_v39, %v564_v39 }
 0x90a   :  { %567 = vrot.lane.b32.xlu1 %v565_v40, %s1013_s24 }
 0x97c   :  { %v568_v41 = vpop.permute.xlu1 %567 }
 0x97d   :  { %851 = vmatmul.mubr.msk.bf16.vlgmr.msra.gmra.mxu1 %vm208_vm1, %v568_v41 }
 0x97e   :  { %725 = vmatpush1.bf16.msra.mxu1 %v1049_v3  ;;  %748 = vmatprep.mubr.bf16.mxu1 %v1012_v1 }
 0x97f   :  { %726 = vmatprep.subr.bf16.mxu1 %v1052_v4 }
 0x982   :  { %727 = vmatpush1.bf16.msra.mxu1 %v1054_v5 }
 0x983   :  { %728 = vmatprep.subr.bf16.mxu1 %v1058_v8 }
 0x986   :  { %729 = vmatpush1.bf16.msra.mxu1 %v1064_v10 }
 0x987   :  { %730 = vmatprep.subr.bf16.mxu1 %v1066_v11 }
 0x98a   :  { %731 = vmatpush1.bf16.msra.mxu1 %v1074_v12 }
 0xa3d   :  { %v606_v42 = vpop.f32.mrf.mxu1 }
 0xa3e   :  { %v613_v43 = vadd.f32 %v606_v42, %v1139_v17 }
 0xa3f   :  { %v608_v44 = vpop.f32.mrf.mxu1 }
 0xa40   :  { %v852_v45 = vmul.f32 -1.442695, %v613_v43  ;;  %v614_v4 = vadd.f32 %v608_v44, %v1141_v18 }
 0xa41   :  { %v610_v3 = vpop.f32.mrf.mxu1 }
 0xa42   :  { %947 = vpow2.f32 %v852_v45  ;;  %v853_v11 = vmul.f32 -1.442695, %v614_v4 }
 0xa43   :  { %v611_v1 = vpop.f32.mrf.mxu1  ;;  %949 = vtanh.f32 %v614_v4 }
 0xa4f   :  { %v948_v46 = vpop.eup %947 }
 0xa50   :  { %v621_v5 = vadd.f32 1.0, %v948_v46  ;;  %v950_v8 = vpop.eup %949 }
 0xa52   :  { %951 = vrcp.f32 %v621_v5  ;;  %v861_v5 = vld [vmem:[#allocation2] ss:$0 sm:$0xff] }
 0xa53   :  { %953 = vpow2.f32 %v853_v11 }
 0xa5f   :  { %v952_v10 = vpop.eup %951 }
 0xa60   :  { %v629_v47 = vmul.f32 %v952_v10, %v950_v8  ;;  %v954_v12 = vpop.eup %953  ;;  %v628_v48 = vmul.f32 %v952_v10, %v562_v37 }
 0xa61   :  { %v622_v17 = vadd.f32 1.0, %v954_v12 }
 0xa62   :  { %631 = vrot.lane.b32.xlu0 %v629_v47, %s1013_s24 }
 0xa63   :  { %955 = vrcp.f32 %v622_v17 }
 0xa70   :  { %v956_v51 = vpop.eup %955 }
 0xad4   :  { %v632_v49 = vpop.permute.xlu0 %631 }
 0xad5   :  { %v634_v50 = vadd.f32 %v632_v49, %v628_v48 }
 0xad7   :  { %957 = vtanh.f32 %v634_v50 }
 0xae4   :  { %v958_v18 = vpop.eup %957 }
 0xae5   :  { %v636_v52 = vmul.f32 %v958_v18, %v956_v51 }
 0xae7   :  { %v637_v53 = vpack.c.bf16 %v636_v52, %v636_v52 }
 0xae9   :  { %639 = vrot.lane.b32.xlu1 %v637_v53, %s1013_s24 }
 0xb5b   :  { %v640_v54 = vpop.permute.xlu1 %639 }
 0xb5c   :  { %854 = vmatmul.mubr.msk.bf16.vlgmr.msra.gmra.mxu0 %vm208_vm1, %v640_v54 }
 0xc1c   :  { %v678_v55 = vpop.f32.mrf.mxu0 }
 0xc1d   :  { %v685_v56 = vadd.f32 %v678_v55, %v1143_v19 }
 0xc1e   :  { %v680_v57 = vpop.f32.mrf.mxu0 }
 0xc1f   :  { %v855_v58 = vmul.f32 -1.442695, %v685_v56  ;;  %v686_v60 = vadd.f32 %v680_v57, %v1145_v20 }
 0xc20   :  { %v682_v2 = vpop.f32.mrf.mxu0 }
 0xc21   :  { %959 = vpow2.f32 %v855_v58  ;;  %v856_v7 = vmul.f32 -1.442695, %v686_v60 }
 0xc22   :  { %v683_v59 = vpop.f32.mrf.mxu0  ;;  %961 = vtanh.f32 %v686_v60 }
 0xc2e   :  { %v960_v61 = vpop.eup %959 }
 0xc2f   :  { %v693_v62 = vadd.f32 1.0, %v960_v61  ;;  %v962_v63 = vpop.eup %961 }
 0xc31   :  { %963 = vrcp.f32 %v693_v62 }
 0xc32   :  { %965 = vpow2.f32 %v856_v7 }
 0xc3e   :  { %v964_v0 = vpop.eup %963 }
 0xc3f   :  { %v701_v6 = vmul.f32 %v964_v0, %v962_v63  ;;  %v966_v9 = vpop.eup %965  ;;  %v700_v13 = vmul.f32 %v964_v0, %v634_v50 }
 0xc40   :  { %v694_v19 = vadd.f32 1.0, %v966_v9 }
 0xc41   :  { %703 = vrot.lane.b32.xlu0 %v701_v6, %s1013_s24 }
 0xc42   :  { %967 = vrcp.f32 %v694_v19 }
 0xc4f   :  { %v968_v24 = vpop.eup %967 }
 0xcb3   :  { %v704_v14 = vpop.permute.xlu0 %703 }
 0xcb4   :  { %v706_v23 = vadd.f32 %v704_v14, %v700_v13 }
 0xcb6   :  { %969 = vtanh.f32 %v706_v23 }
 0xcc3   :  { %v970_v20 = vpop.eup %969 }
 0xcc4   :  { %v708_v25 = vmul.f32 %v970_v20, %v968_v24 }
 0xcc6   :  { %v709_v26 = vpack.c.bf16 %v708_v25, %v708_v25 }
 0xcc8   :  { %711 = vrot.lane.b32.xlu1 %v709_v26, %s1013_s24 }
 0xccc   :  { %787 = vrot.lane.b32.xlu1 %v860_v28, %s1013_s24 }
 0xd3a   :  { %v712_v27 = vpop.permute.xlu1 %711 }
 0xd3b   :  { %857 = vmatmul.mubr.msk.bf16.vlgmr.msra.gmra.mxu1 %vm208_vm1, %v712_v27 }
 0xd3e   :  { %v788_v45 = vpop.permute.xlu1 %787 }
 0xdfb   :  { %v750_v29 = vpop.f32.mrf.mxu1 }
 0xdfc   :  { %v757_v30 = vadd.f32 %v750_v29, %v1147_v21 }
 0xdfd   :  { %v752_v31 = vpop.f32.mrf.mxu1 }
 0xdfe   :  { %v858_v32 = vmul.f32 -1.442695, %v757_v30  ;;  %v758_v15 = vadd.f32 %v752_v31, %v1149_v22 }
 0xdff   :  { %v754_v33 = vpop.f32.mrf.mxu1 }
 0xe00   :  { %971 = vpow2.f32 %v858_v32  ;;  %v859_v39 = vmul.f32 -1.442695, %v758_v15 }
 0xe01   :  { %v755_v34 = vpop.f32.mrf.mxu1  ;;  %973 = vtanh.f32 %v758_v15 }
 0xe0d   :  { %v972_v35 = vpop.eup %971 }
 0xe0e   :  { %v765_v36 = vadd.f32 1.0, %v972_v35  ;;  %v974_v37 = vpop.eup %973 }
 0xe10   :  { %975 = vrcp.f32 %v765_v36 }
 0xe11   :  { %977 = vpow2.f32 %v859_v39 }
 0xe1d   :  { %v976_v38 = vpop.eup %975 }
 0xe1e   :  { %v773_v16 = vmul.f32 %v976_v38, %v974_v37  ;;  %v978_v40 = vpop.eup %977  ;;  %v772_v41 = vmul.f32 %v976_v38, %v706_v23 }
 0xe1f   :  { %v766_v21 = vadd.f32 1.0, %v978_v40 }
 0xe20   :  { %775 = vrot.lane.b32.xlu0 %v773_v16, %s1013_s24 }
 0xe21   :  { %979 = vrcp.f32 %v766_v21 }
 0xe2e   :  { %v980_v44 = vpop.eup %979 }
 0xe92   :  { %v776_v42 = vpop.permute.xlu0 %775 }
 0xe93   :  { %v778_v43 = vadd.f32 %v776_v42, %v772_v41 }
 0xe95   :  { %981 = vtanh.f32 %v778_v43 }
 0xea2   :  { %v982_v22 = vpop.eup %981 }
 0xea3   :  { %v780_v3 = vmul.f32 %v982_v22, %v980_v44 }
 0xea5   :  { %v790_v1 = vmul.f32 %v788_v45, %v780_v3 }
 0xea7   :  { %792 = vrot.lane.b32.xlu0 %v790_v1, %s1013_s24 }
 0xf19   :  { %v793_v4 = vpop.permute.xlu0 %792 }
 0xf1a   :  { %v795_v46 = vsel %vm208_vm1, %v793_v4, 0.0 }
 0xf1b   :  { %796 = vadd.xlane.f32.xlu1 %v795_v46 }
 0xfa4   :  { %v797_v8 = vpop.xlane.xlu1 %796 }
 0xfa5   :  { %v805_v10 = vadd.f32 %v861_v5, %v797_v8 }
 0xfa7   :  { %v862_v47 = vmul.f32 -1.442695, %v805_v10 }
 0xfa9   :  { %983 = vpow2.f32 %v862_v47 }
 0xfb6   :  { %v984_v11 = vpop.eup %983 }
 0xfb7   :  { %v809_v12 = vadd.f32 1.0, %v984_v11 }
 0xfb9   :  { %985 = vrcp.f32 %v809_v12 }
 0xfc6   :  { %v986_v17 = vpop.eup %985 }
 0xfc7   :  { %813 = vst.msk [vmem:[%s1213_s4] sm:$0xff] %vm812_vm2, %v986_v17 }
 0xfc8   :  { %818 = vsyncpa [#allocation4], 1 }

</bundles_post_ra>
